<compile_context>
chip_gen: v6e
topology: v6e:2x2x1
jax: 0.10.0
libtpu: 0.0.40
codegen_flags: <defaults>
</compile_context>

<pallas_src>
import jax
import jax.numpy as jnp
import numpy as np
from jax import lax
from jax.experimental import pallas as pl
from jax.experimental.pallas import tpu as pltpu

NSTAGE = 20  # fixed by the PyTorch module (nstage = 20)


def _round_up(n, m):
    return ((n + m - 1) // m) * m


def cnn_kernel(x_ref, w1_ref, b1_ref, w2_ref, b2_ref, wf_ref, bf_ref, out_ref):
    # x_ref:  (20*E, TB) bf16   columns = batch samples (lanes), rows = stage*E + e
    # w1_ref: (160, 20*E) bf16  conv1 folded dense matrix, rows = t*8 + o
    # w2_ref: (160, 80)  bf16   conv2 folded dense matrix, rows = t*16 + o, cols = s*8 + c
    # wf_ref: (1, 80)    bf16   fc weights reordered to rows s*16 + o
    # biases f32, accumulation f32, output f32
    tb = x_ref.shape[1]
    act_dt = w1_ref.dtype

    # ---- conv1: Conv2d(1,8,(7,E),pad=(3,0)) as one dense MXU matmul ----
    c1 = jnp.dot(w1_ref[...], x_ref[...],
                 preferred_element_type=jnp.float32) + b1_ref[...]          # (160, TB) f32

    # ---- relu(max_pool1d(2)) over stage axis (rows t*8+o, pool pairs t=2j,2j+1) ----
    c1r = c1.reshape(10, 16, tb)
    p1 = jnp.maximum(jnp.maximum(c1r[:, 0:8, :], c1r[:, 8:16, :]), 0.0).reshape(80, tb)

    # ---- conv2: Conv1d(8,16,3,pad=1) as one dense MXU matmul (bf16 operands) ----
    c2 = jnp.dot(w2_ref[...], p1.astype(act_dt),
                 preferred_element_type=jnp.float32) + b2_ref[...]          # (160, TB) f32

    # ---- relu(max_pool1d(2)) ----
    c2r = c2.reshape(5, 32, tb)
    p2 = jnp.maximum(jnp.maximum(c2r[:, 0:16, :], c2r[:, 16:32, :]), 0.0).reshape(80, tb)

    # dropout: identity at inference (training=False)
    # ---- fc + sigmoid, lane-dense (1, TB) result ----
    logit = jnp.dot(wf_ref[...], p2.astype(act_dt),
                    preferred_element_type=jnp.float32) + bf_ref[...]       # (1, TB) f32
    sig = pl.reciprocal(1.0 + jnp.exp(-logit), approx=True)
    out_ref[...] = sig.reshape(1, 1, tb)


def fold_cnn_params(params, act_dtype=jnp.bfloat16):
    """Hoisted weight preprocessing — run once per parameter set, outside the forward path."""
    w1, b1, w2, b2, wf, bf = (params[k] for k in ("w1", "b1", "w2", "b2", "wf", "bf"))
    E = int(w1.shape[3])

    # ---- fold conv1 into a dense (160, 20E) matrix: W1T[t*8+o, s*E+e] = w1[o,0,s-t+3,e] ----
    t1 = jnp.arange(NSTAGE)[:, None]
    s1 = jnp.arange(NSTAGE)[None, :]
    dt1 = s1 - t1 + 3
    valid1 = ((dt1 >= 0) & (dt1 < 7)).astype(jnp.float32)
    w1k = w1.reshape(8, 7, E)
    W1_full = w1k[:, jnp.clip(dt1, 0, 6), :] * valid1[None, :, :, None]      # (8, 20, 20, E)
    W1T = jnp.transpose(W1_full, (1, 0, 2, 3)).reshape(NSTAGE * 8, NSTAGE * E)
    b1col = jnp.tile(b1, NSTAGE).reshape(NSTAGE * 8, 1).astype(jnp.float32)

    # ---- fold conv2 into a dense (160, 80) matrix: W2T[t*16+o, s*8+c] = w2[o,c,s-t+1] ----
    L2 = NSTAGE // 2
    t2 = jnp.arange(L2)[:, None]
    s2 = jnp.arange(L2)[None, :]
    dt2 = s2 - t2 + 1
    valid2 = ((dt2 >= 0) & (dt2 < 3)).astype(jnp.float32)
    W2_full = w2[:, :, jnp.clip(dt2, 0, 2)] * valid2[None, None, :, :]       # (16, 8, 10, 10)
    W2T = jnp.transpose(W2_full, (2, 0, 3, 1)).reshape(L2 * 16, L2 * 8)
    b2col = jnp.tile(b2, L2).reshape(L2 * 16, 1).astype(jnp.float32)

    # fc weight: torch flatten order c*5+s  ->  kernel row order s*16+c
    wfm = wf.reshape(16, 5).T.reshape(1, 80)
    bfr = bf.reshape(1, 1).astype(jnp.float32)

    return {
        "W1T": W1T.astype(act_dtype), "b1col": b1col,
        "W2T": W2T.astype(act_dtype), "b2col": b2col,
        "wfm": wfm.astype(act_dtype), "bfr": bfr,
        "emb_size": E,
    }


def cnn_forward(x_idx, emb, folded, tb=512):
    """x_idx: (B, NSTAGE, L) int ids; emb: (V, E) f32; folded: fold_cnn_params() output."""
    B, _, L = x_idx.shape
    E = emb.shape[1]
    assert E == folded["emb_size"]
    act_dtype = folded["W1T"].dtype
    L2 = NSTAGE // 2

    # ---- batch tiling: lane-dense batch tile.  Default 512 (sweep 512/1024), cap 2048.
    # Clamp to the 128-rounded batch so tiny batches do not over-pad.
    # For v7x megacore, prefer a TB that keeps num_tiles >= 2 at large B.
    tb_eff = min(max(int(tb), 128), 2048)
    tb_eff = max(128, min(tb_eff, _round_up(B, 128)))
    num_tiles = pl.cdiv(B, tb_eff)
    b_pad = num_tiles * tb_eff

    # ---- XLA glue: embedding gather, mean over L, layout change and 1/L scale fused in
    # one einsum.  Produces (stage, emb, batch) directly — no standalone transpose pass.
    X3 = jnp.einsum("bsle->seb", emb[x_idx]) * (1.0 / L)          # (20, E, B) f32
    if b_pad != B:
        X3 = jnp.pad(X3, ((0, 0), (0, 0), (0, b_pad - B)))
    X = X3.reshape(NSTAGE * E, b_pad).astype(act_dtype)            # (20E, Bpad) bf16

    cp_kwargs = dict(dimension_semantics=("parallel",))
    if tb_eff > 1024:
        # large tiles: raise the scoped VMEM limit explicitly (stays well under v7x 64 MiB)
        cp_kwargs["vmem_limit_bytes"] = 48 * 1024 * 1024

    out = pl.pallas_call(
        cnn_kernel,
        out_shape=jax.ShapeDtypeStruct((num_tiles, 1, tb_eff), jnp.float32),
        grid=(num_tiles,),
        in_specs=[
            pl.BlockSpec((NSTAGE * E, tb_eff), lambda i: (0, i)),
            pl.BlockSpec((NSTAGE * 8, NSTAGE * E), lambda i: (0, 0)),
            pl.BlockSpec((NSTAGE * 8, 1), lambda i: (0, 0)),
            pl.BlockSpec((L2 * 16, L2 * 8), lambda i: (0, 0)),
            pl.BlockSpec((L2 * 16, 1), lambda i: (0, 0)),
            pl.BlockSpec((1, 80), lambda i: (0, 0)),
            pl.BlockSpec((1, 1), lambda i: (0, 0)),
        ],
        out_specs=pl.BlockSpec((1, 1, tb_eff), lambda i: (i, 0, 0)),
        compiler_params=pltpu.CompilerParams(**cp_kwargs),
    )(X, folded["W1T"], folded["b1col"], folded["W2T"], folded["b2col"],
      folded["wfm"], folded["bfr"])

    return out.reshape(b_pad)[:B].reshape(B, 1)


def cnn_reference(x_idx, params):
    """Pure-JAX/XLA f32 reference reproducing the PyTorch forward exactly."""
    emb, w1, b1, w2, b2, wf, bf = (params[k] for k in ("emb", "w1", "b1", "w2", "b2", "wf", "bf"))
    B, _, _ = x_idx.shape
    E = emb.shape[1]
    xm = jnp.mean(emb[x_idx], axis=2)                        # (B, NSTAGE, E)
    x4 = xm.reshape(B, 1, NSTAGE, E)                         # NCHW
    c1 = lax.conv_general_dilated(x4, w1, (1, 1), ((3, 3), (0, 0)),
                                  dimension_numbers=("NCHW", "OIHW", "NCHW"))
    c1 = (c1 + b1.reshape(1, 8, 1, 1)).reshape(B, 8, NSTAGE)
    p1 = jnp.maximum(jnp.max(c1.reshape(B, 8, NSTAGE // 2, 2), axis=3), 0.0)   # (B, 8, 10)
    x2 = p1.reshape(B, 8, NSTAGE // 2, 1)
    c2 = lax.conv_general_dilated(x2, w2.reshape(16, 8, 3, 1), (1, 1), ((1, 1), (0, 0)),
                                  dimension_numbers=("NCHW", "OIHW", "NCHW"))
    c2 = (c2 + b2.reshape(1, 16, 1, 1)).reshape(B, 16, NSTAGE // 2)            # (B, 16, 10)
    p2 = jnp.maximum(jnp.max(c2.reshape(B, 16, 5, 2), axis=3), 0.0)            # (B, 16, 5)
    flat = p2.reshape(B, -1)                                                   # (B, 80) torch view order
    return jax.nn.sigmoid(flat @ wf.T + bf.reshape(1, 1))


if __name__ == "__main__":
    B, L, V, E = 2, 8, 50, 32  # batch, seq-per-stage, vocab, emb_size
    key = jax.random.PRNGKey(0)
    ks = jax.random.split(key, 8)
    params = {
        "emb": jax.random.normal(ks[0], (V, E), jnp.float32),
        "w1": 0.1 * jax.random.normal(ks[1], (8, 1, 7, E), jnp.float32),
        "b1": 0.1 * jax.random.normal(ks[2], (8,), jnp.float32),
        "w2": 0.1 * jax.random.normal(ks[3], (16, 8, 3), jnp.float32),
        "b2": 0.1 * jax.random.normal(ks[4], (16,), jnp.float32),
        "wf": 0.1 * jax.random.normal(ks[5], (1, NSTAGE * 16 // 4), jnp.float32),
        "bf": 0.1 * jax.random.normal(ks[6], (1,), jnp.float32),
    }
    x_idx = jax.random.randint(ks[7], (B, NSTAGE, L), 0, V)

    # Weight folding is hoisted out of the forward path (run once per parameter set).
    folded = jax.tree_util.tree_map(
        lambda a: jax.block_until_ready(a) if isinstance(a, jax.Array) else a,
        fold_cnn_params(params))

    out = jax.block_until_ready(cnn_forward(x_idx, params["emb"], folded))
    ref = jax.block_until_ready(cnn_reference(x_idx, params))

    assert out.shape == (B, 1)
    # bf16 activations/weights + approx reciprocal: loosened tolerance vs f32 reference.
    np.testing.assert_allclose(np.asarray(out), np.asarray(ref), rtol=2e-2, atol=2e-2)
    print("KERNEL_OK")
</pallas_src>

<mosaic_0001>
module attributes {stable_mosaic.version = 11 : i64} {
  func.func @cnn_kernel(%arg0: i32, %arg1: memref<640x128xbf16, #tpu.memory_space<vmem>>, %arg2: memref<160x640xbf16, #tpu.memory_space<vmem>>, %arg3: memref<160x1xf32, #tpu.memory_space<vmem>>, %arg4: memref<160x80xbf16, #tpu.memory_space<vmem>>, %arg5: memref<160x1xf32, #tpu.memory_space<vmem>>, %arg6: memref<1x80xbf16, #tpu.memory_space<vmem>>, %arg7: memref<1x1xf32, #tpu.memory_space<vmem>>, %arg8: memref<1x1x128xf32, #tpu.memory_space<vmem>>) attributes {dimension_semantics = [#tpu.dimension_semantics<parallel>], iteration_bounds = array<i64: 1>, scalar_prefetch = 0 : i64, scratch_operands = 0 : i64, tpu.core_type = #tpu.core_type<tc>, window_params = [{transform_indices = @transform_0, window_bounds = array<i64: 640, 128>}, {pipeline_mode = #tpu.pipeline_mode<synchronous>, transform_indices = @transform_1, window_bounds = array<i64: 160, 640>}, {pipeline_mode = #tpu.pipeline_mode<synchronous>, transform_indices = @transform_2, window_bounds = array<i64: 160, 1>}, {pipeline_mode = #tpu.pipeline_mode<synchronous>, transform_indices = @transform_3, window_bounds = array<i64: 160, 80>}, {pipeline_mode = #tpu.pipeline_mode<synchronous>, transform_indices = @transform_4, window_bounds = array<i64: 160, 1>}, {pipeline_mode = #tpu.pipeline_mode<synchronous>, transform_indices = @transform_5, window_bounds = array<i64: 1, 80>}, {pipeline_mode = #tpu.pipeline_mode<synchronous>, transform_indices = @transform_6, window_bounds = array<i64: 1, 1>}, {transform_indices = @transform_7, window_bounds = array<i64: 1, 1, 128>}]} {
    %c0 = arith.constant 0 : index
    %c0_0 = arith.constant 0 : index
    %0 = vector.load %arg2[%c0, %c0_0] : memref<160x640xbf16, #tpu.memory_space<vmem>>, vector<160x640xbf16>
    %c0_1 = arith.constant 0 : index
    %c0_2 = arith.constant 0 : index
    %1 = vector.load %arg1[%c0_1, %c0_2] : memref<640x128xbf16, #tpu.memory_space<vmem>>, vector<640x128xbf16>
    %cst = arith.constant dense<0.000000e+00> : vector<160x128xf32>
    %2 = tpu.matmul %0, %1, %cst {dimension_numbers = #tpu.dot_dimension_numbers<[1], [0], [0], [1], [0, 0, 1, 1], [], []>} : vector<160x640xbf16>, vector<640x128xbf16>, vector<160x128xf32> -> vector<160x128xf32>
    %c0_3 = arith.constant 0 : index
    %c0_4 = arith.constant 0 : index
    %3 = vector.load %arg3[%c0_3, %c0_4] : memref<160x1xf32, #tpu.memory_space<vmem>>, vector<160x1xf32>
    %4 = vector.broadcast %3 : vector<160x1xf32> to vector<160x128xf32>
    %5 = arith.addf %2, %4 : vector<160x128xf32>
    %6 = vector.shape_cast %5 : vector<160x128xf32> to vector<10x16x128xf32>
    %7 = vector.extract_strided_slice %6 {offsets = [0, 0, 0], sizes = [10, 8, 128], strides = [1, 1, 1]} : vector<10x16x128xf32> to vector<10x8x128xf32>
    %8 = vector.extract_strided_slice %6 {offsets = [0, 8, 0], sizes = [10, 8, 128], strides = [1, 1, 1]} : vector<10x16x128xf32> to vector<10x8x128xf32>
    %9 = arith.maximumf %7, %8 : vector<10x8x128xf32>
    %cst_5 = arith.constant 0.000000e+00 : f32
    %10 = vector.broadcast %cst_5 : f32 to vector<10x8x128xf32>
    %11 = arith.maximumf %9, %10 : vector<10x8x128xf32>
    %12 = vector.shape_cast %11 : vector<10x8x128xf32> to vector<80x128xf32>
    %c0_6 = arith.constant 0 : index
    %c0_7 = arith.constant 0 : index
    %13 = vector.load %arg4[%c0_6, %c0_7] : memref<160x80xbf16, #tpu.memory_space<vmem>>, vector<160x80xbf16>
    %14 = arith.truncf %12 : vector<80x128xf32> to vector<80x128xbf16>
    %cst_8 = arith.constant dense<0.000000e+00> : vector<160x128xf32>
    %15 = tpu.matmul %13, %14, %cst_8 {dimension_numbers = #tpu.dot_dimension_numbers<[1], [0], [0], [1], [0, 0, 1, 1], [], []>} : vector<160x80xbf16>, vector<80x128xbf16>, vector<160x128xf32> -> vector<160x128xf32>
    %c0_9 = arith.constant 0 : index
    %c0_10 = arith.constant 0 : index
    %16 = vector.load %arg5[%c0_9, %c0_10] : memref<160x1xf32, #tpu.memory_space<vmem>>, vector<160x1xf32>
    %17 = vector.broadcast %16 : vector<160x1xf32> to vector<160x128xf32>
    %18 = arith.addf %15, %17 : vector<160x128xf32>
    %19 = vector.shape_cast %18 : vector<160x128xf32> to vector<5x32x128xf32>
    %20 = vector.extract_strided_slice %19 {offsets = [0, 0, 0], sizes = [5, 16, 128], strides = [1, 1, 1]} : vector<5x32x128xf32> to vector<5x16x128xf32>
    %21 = vector.extract_strided_slice %19 {offsets = [0, 16, 0], sizes = [5, 16, 128], strides = [1, 1, 1]} : vector<5x32x128xf32> to vector<5x16x128xf32>
    %22 = arith.maximumf %20, %21 : vector<5x16x128xf32>
    %cst_11 = arith.constant 0.000000e+00 : f32
    %23 = vector.broadcast %cst_11 : f32 to vector<5x16x128xf32>
    %24 = arith.maximumf %22, %23 : vector<5x16x128xf32>
    %25 = vector.shape_cast %24 : vector<5x16x128xf32> to vector<80x128xf32>
    %c0_12 = arith.constant 0 : index
    %c0_13 = arith.constant 0 : index
    %26 = vector.load %arg6[%c0_12, %c0_13] : memref<1x80xbf16, #tpu.memory_space<vmem>>, vector<1x80xbf16>
    %27 = arith.truncf %25 : vector<80x128xf32> to vector<80x128xbf16>
    %cst_14 = arith.constant dense<0.000000e+00> : vector<1x128xf32>
    %28 = tpu.matmul %26, %27, %cst_14 {dimension_numbers = #tpu.dot_dimension_numbers<[1], [0], [0], [1], [0, 0, 1, 1], [], []>} : vector<1x80xbf16>, vector<80x128xbf16>, vector<1x128xf32> -> vector<1x128xf32>
    %c0_15 = arith.constant 0 : index
    %c0_16 = arith.constant 0 : index
    %29 = vector.load %arg7[%c0_15, %c0_16] : memref<1x1xf32, #tpu.memory_space<vmem>>, vector<1x1xf32>
    %30 = vector.broadcast %29 : vector<1x1xf32> to vector<1x128xf32>
    %31 = arith.addf %28, %30 : vector<1x128xf32>
    %cst_17 = arith.constant 0.000000e+00 : f32
    %32 = vector.broadcast %cst_17 : f32 to vector<1x128xf32>
    %33 = arith.subf %32, %31 : vector<1x128xf32>
    %34 = math.exp %33 : vector<1x128xf32>
    %cst_18 = arith.constant 1.000000e+00 : f32
    %35 = vector.broadcast %cst_18 : f32 to vector<1x128xf32>
    %36 = arith.addf %35, %34 : vector<1x128xf32>
    %37 = tpu.reciprocal %36 {approx = true} : vector<1x128xf32> -> vector<1x128xf32>
    %38 = vector.shape_cast %37 : vector<1x128xf32> to vector<1x1x128xf32>
    %c0_19 = arith.constant 0 : index
    %c0_20 = arith.constant 0 : index
    %c0_21 = arith.constant 0 : index
    %39 = vector.load %arg8[%c0_19, %c0_20, %c0_21] : memref<1x1x128xf32, #tpu.memory_space<vmem>>, vector<1x1x128xf32>
    tpu.vector_store %arg8[%c0_19, %c0_20, %c0_21], %38 {strides = array<i32>} : memref<1x1x128xf32, #tpu.memory_space<vmem>>, vector<1x1x128xf32>,
    return
  }
  func.func @transform_0(%arg0: i32) -> (i32, i32) {
    %c0_i32 = arith.constant 0 : i32
    %c0_i32_0 = arith.constant 0 : i32
    return %c0_i32, %arg0 : i32, i32
  }
  func.func @transform_1(%arg0: i32) -> (i32, i32) {
    %c0_i32 = arith.constant 0 : i32
    %c0_i32_0 = arith.constant 0 : i32
    %c0_i32_1 = arith.constant 0 : i32
    return %c0_i32, %c0_i32_0 : i32, i32
  }
  func.func @transform_2(%arg0: i32) -> (i32, i32) {
    %c0_i32 = arith.constant 0 : i32
    %c0_i32_0 = arith.constant 0 : i32
    %c0_i32_1 = arith.constant 0 : i32
    return %c0_i32, %c0_i32_0 : i32, i32
  }
  func.func @transform_3(%arg0: i32) -> (i32, i32) {
    %c0_i32 = arith.constant 0 : i32
    %c0_i32_0 = arith.constant 0 : i32
    %c0_i32_1 = arith.constant 0 : i32
    return %c0_i32, %c0_i32_0 : i32, i32
  }
  func.func @transform_4(%arg0: i32) -> (i32, i32) {
    %c0_i32 = arith.constant 0 : i32
    %c0_i32_0 = arith.constant 0 : i32
    %c0_i32_1 = arith.constant 0 : i32
    return %c0_i32, %c0_i32_0 : i32, i32
  }
  func.func @transform_5(%arg0: i32) -> (i32, i32) {
    %c0_i32 = arith.constant 0 : i32
    %c0_i32_0 = arith.constant 0 : i32
    %c0_i32_1 = arith.constant 0 : i32
    return %c0_i32, %c0_i32_0 : i32, i32
  }
  func.func @transform_6(%arg0: i32) -> (i32, i32) {
    %c0_i32 = arith.constant 0 : i32
    %c0_i32_0 = arith.constant 0 : i32
    %c0_i32_1 = arith.constant 0 : i32
    return %c0_i32, %c0_i32_0 : i32, i32
  }
  func.func @transform_7(%arg0: i32) -> (i32, i32, i32) {
    %c0_i32 = arith.constant 0 : i32
    %c0_i32_0 = arith.constant 0 : i32
    %c0_i32_1 = arith.constant 0 : i32
    return %arg0, %c0_i32, %c0_i32_0 : i32, i32, i32
  }
}

</mosaic_0001>

<bundles_post_ra>
// kernel: tpu_custom_call.1
= control target key start
LH: loop header
LB: loop body
LE: loop exit
PB: predicated region body
PF: predicated region fallthrough
CT: control target
= control target key end

     0   :  { %s2699_s0 = inlined_call_operand.vmem [shape: bf16[640,128], index: 0, kind: input, shape index: {}]   ;;  %s2700_s1 = inlined_call_operand.hbm [shape: bf16[160,640], index: 1, kind: input, shape index: {}]   ;;  %s2701_s2 = inlined_call_operand.vmem [shape: f32[160,1], index: 2, kind: input, shape index: {}]   ;;  %s2702_s3 = inlined_call_operand.hbm [shape: bf16[160,80], index: 3, kind: input, shape index: {}]   ;;  %s2703_s4 = inlined_call_operand.vmem [shape: f32[160,1], index: 4, kind: input, shape index: {}]   ;;  %s2704_s5 = inlined_call_operand.vmem [shape: bf16[1,80], index: 5, kind: input, shape index: {}]   ;;  %s2705_s6 = inlined_call_operand.<no memory space> [shape: f32[1,1], index: 6, kind: input, shape index: {}]   ;;  %s2706_s7 = inlined_call_operand.hbm [shape: f32[1,1,128], index: 7, kind: output, shape index: {}]  }
   0x1   :  { %v12_v0 = vstv %s2705_s6 }
   0x2   :  { %13 = vst [vmem:[#allocation2] sm:$0x1] %v12_v0 }
   0x3   :  { %14 = vsyncpa [#allocation4], 0 }
   0x4   :  { %15 = vsyncpa [#allocation7], 0 }
   0x5   :  { %16 = vsyncpa [#allocation5], 0  ;;  %s2201_s26 = smov [#allocation3]  }
   0x6   :  { %s24_s27 = sshll.u32 %s2201_s26, 4  ;;  %s25_s27 = int_to_ptr.vmem [resolvable:$true] %s24_s27 }
   0x7   :  { %s2143_s28 = scalar_lea.vmem %s25_s27, 6400  ;;  %p2148_p1 = scmp.lt.s32.totalorder %s25_s27, %s25_s27 }
   0x8   :  { %p2144_p0 = scmp.ne.s32.totalorder %s25_s27, %s2143_s28  ;;  %p2149_p2 = scmp.lt.s32.totalorder %s2143_s28, %s2143_s28 }
   0xa   :  { %p2150_p3 = por %p2149_p2, %p2148_p1 }
   0xc   :  { %p2151_p4 = pnand %p2150_p3, %p2144_p0 }
   0xe   :  { %2154 = shalt.err (!%p2151_p4)
}
   0xf   :  { %s2202_s29 = smov 320   ;;  %s2203_s30 = smov 20  }
  0x10   :  { %30 = dma.hbm_to_vmem [thread:$0]  %s2700_s1, 6400, %s25_s27, [#allocation4], %s2202_s29, %s2202_s29, %s2203_s30  }
  0x11   :  { %s2204_s6 = smov [#allocation6]  }
  0x12   :  { %s38_s10 = sshll.u32 %s2204_s6, 4  ;;  %s39_s10 = int_to_ptr.vmem [resolvable:$true] %s38_s10 }
  0x13   :  { %s2163_s11 = scalar_lea.vmem %s39_s10, 1280  ;;  %p2168_p6 = scmp.lt.s32.totalorder %s39_s10, %s39_s10 }
  0x14   :  { %p2164_p5 = scmp.ne.s32.totalorder %s39_s10, %s2163_s11  ;;  %p2169_p7 = scmp.lt.s32.totalorder %s2163_s11, %s2163_s11 }
  0x16   :  { %p2170_p8 = por %p2169_p7, %p2168_p6 }
  0x18   :  { %p2171_p9 = pnand %p2170_p8, %p2164_p5 }
  0x1a   :  { %2174 = shalt.err (!%p2171_p9)
}
  0x1b   :  { %s2205_s12 = smov 64   ;;  %s2206_s13 = smov 4  }
  0x1c   :  { %44 = dma.hbm_to_vmem [thread:$0]  %s2702_s3, 1280, %s39_s10, [#allocation7], %s2205_s12, %s2205_s12, %s2206_s13  }
  0x1d   :  { %2195 = dma.done.wait [#allocation4], 6400  }
  0x1e   :  { %2196 = vsyncadd [#allocation4], 4294960896 }
  0x1f   :  { %2197 = dma.done.wait [#allocation7], 1280  }
  0x20   :  { %2198 = vsyncadd [#allocation7], 4294966016  ;;  %v2207_v1 = vmov 0   ;;  %v2011_v2 = vld [vmem:[%s2699_s0 + $0x78] sm:$0xff]   ;;  %v2015_v6 = vld [vmem:[%s2699_s0 + $0x70] sm:$0xff]   ;;  %vm1372_vm0 = vcmask 654336  }
  0x21   :  { %2009 = vset.pattern.permute.xlu0 %v2207_v1  ;;  %2010 = vset.pattern.permute.xlu1 %v2207_v1  ;;  %v2012_v3 = vld [vmem:[%s2699_s0 + $0x38] sm:$0xff]   ;;  %v2016_v7 = vld [vmem:[%s2699_s0 + $0x30] sm:$0xff]   ;;  %v2019_v10 = vld [vmem:[%s2699_s0 + $0x68] sm:$0xff]   ;;  %vm2209_vm1 = vmmov 0   ;;  %s2210_s16 = smov [#allocation8]  }
  0x22   :  { %1728 = vmatprep.subr.bf16.mxu0 %v2011_v2  ;;  %v2013_v4 = vld [vmem:[%s2699_s0 + $0xf8] sm:$0xff]   ;;  %v2017_v8 = vld [vmem:[%s2699_s0 + $0xf0] sm:$0xff]   ;;  %v2020_v11 = vld [vmem:[%s2699_s0 + $0x28] sm:$0xff]  }
  0x23   :  { %1729 = vmatpush3.bf16.msra.mxu0 %v2012_v3  ;;  %v2014_v5 = vld [vmem:[%s2699_s0 + $0xb8] sm:$0xff]   ;;  %1804 = vmatprep.subr.bf16.mxu1 %v2013_v4  ;;  %v2018_v9 = vld [vmem:[%s2699_s0 + $0xb0] sm:$0xff]   ;;  %v2021_v12 = vld [vmem:[%s2699_s0 + $0xe8] sm:$0xff]  }
  0x24   :  { %1805 = vmatpush3.bf16.msra.mxu1 %v2014_v5  ;;  %1730 = vmatprep.subr.bf16.mxu0 %v2015_v6  ;;  %v2022_v13 = vld [vmem:[%s2699_s0 + $0xa8] sm:$0xff]   ;;  %v2023_v14 = vld [vmem:[%s2699_s0 + $0x60] sm:$0xff]   ;;  %v2027_v18 = vld [vmem:[%s2699_s0 + $0x58] sm:$0xff]  }
  0x25   :  { %1806 = vmatprep.subr.bf16.mxu1 %v2017_v8  ;;  %v2024_v15 = vld [vmem:[%s2699_s0 + $0x20] sm:$0xff]   ;;  %v2028_v19 = vld [vmem:[%s2699_s0 + $0x18] sm:$0xff]   ;;  %v2031_v22 = vld [vmem:[%s2699_s0 + $0x50] sm:$0xff]  }
  0x26   :  { %v2025_v16 = vld [vmem:[%s2699_s0 + $0xe0] sm:$0xff]   ;;  %v2029_v20 = vld [vmem:[%s2699_s0 + $0xd8] sm:$0xff]   ;;  %v2032_v23 = vld [vmem:[%s2699_s0 + $0x10] sm:$0xff]  }
  0x27   :  { %1731 = vmatpush3.bf16.msra.mxu0 %v2016_v7  ;;  %v2026_v17 = vld [vmem:[%s2699_s0 + $0xa0] sm:$0xff]   ;;  %v2030_v21 = vld [vmem:[%s2699_s0 + $0x98] sm:$0xff]   ;;  %v2033_v24 = vld [vmem:[%s2699_s0 + $0xd0] sm:$0xff]  }
  0x28   :  { %1807 = vmatpush3.bf16.msra.mxu1 %v2018_v9  ;;  %1732 = vmatprep.subr.bf16.mxu0 %v2019_v10  ;;  %v2034_v25 = vld [vmem:[%s2699_s0 + $0x90] sm:$0xff]   ;;  %v2035_v26 = vld [vmem:[%s2699_s0 + $0x48] sm:$0xff]   ;;  %v2039_v30 = vld [vmem:[%s2699_s0 + $0x40] sm:$0xff]  }
  0x29   :  { %1808 = vmatprep.subr.bf16.mxu1 %v2021_v12  ;;  %v2036_v27 = vld [vmem:[%s2699_s0 + $0x8] sm:$0xff]   ;;  %v2040_v31 = vld [vmem:[%s2699_s0] sm:$0xff]   ;;  %v216_v47 = vld [vmem:[%s2701_s2 + $0x90] sm:$0xff] }
  0x2a   :  { %v2037_v28 = vld [vmem:[%s2699_s0 + $0xc8] sm:$0xff]   ;;  %v2041_v32 = vld [vmem:[%s2699_s0 + $0xc0] sm:$0xff]   ;;  %310 = vperm.xlu1 %2010, %v216_v47   ;;  %v2082_v51 = vld [vmem:[%s2699_s0 + $0x138] sm:$0xff]  }
  0x2b   :  { %1733 = vmatpush3.bf16.msra.mxu0 %v2020_v11  ;;  %v2038_v29 = vld [vmem:[%s2699_s0 + $0x88] sm:$0xff]   ;;  %v2042_v33 = vld [vmem:[#allocation3] ss:$20 sps:$4 sm:$0xff]   ;;  %v2058_v43 = vld [vmem:[#allocation3 + $0x5c] ss:$20 sps:$4 sm:$0xff]  }
  0x2c   :  { %1809 = vmatpush3.bf16.msra.mxu1 %v2022_v13  ;;  %1734 = vmatprep.subr.bf16.mxu0 %v2023_v14  ;;  %v2044_v34 = vld [vmem:[#allocation3 + $0x4] ss:$20 sps:$4 sm:$0xff]   ;;  %v2046_v36 = vld [vmem:[#allocation3 + $0x8] ss:$20 sps:$4 sm:$0xff]   ;;  %v2048_v37 = vld [vmem:[#allocation3 + $0xc] ss:$20 sps:$4 sm:$0xff]  }
  0x2d   :  { %1810 = vmatprep.subr.bf16.mxu1 %v2025_v16  ;;  %v2045_v35 = vld [vmem:[%s2699_s0 + $0x80] sm:$0xff]   ;;  %850 = vmatprep.mubr.bf16.mxu0 %v2044_v34  ;;  %v2052_v39 = vld [vmem:[#allocation3 + $0x34] ss:$20 sps:$4 sm:$0xff]   ;;  %v2060_v49 = vld [vmem:[#allocation3 + $0x58] ss:$20 sps:$4 sm:$0xff]  }
  0x2e   :  { %v2049_v38 = vld [vmem:[#allocation3 + $0x2c] ss:$20 sps:$4 sm:$0xff]   ;;  %963 = vmatprep.mubr.bf16.mxu1 %v2048_v37  ;;  %v2051_v40 = vld [vmem:[#allocation3 + $0x28] ss:$20 sps:$4 sm:$0xff]   ;;  %v2054_v42 = vld [vmem:[#allocation3 + $0x30] ss:$20 sps:$4 sm:$0xff]  }
  0x2f   :  { %1735 = vmatpush3.bf16.msra.mxu0 %v2024_v15  ;;  %v2055_v41 = vld [vmem:[#allocation3 + $0x54] ss:$20 sps:$4 sm:$0xff]   ;;  %v214_v44 = vld [vmem:[%s2701_s2 + $0x80] sm:$0xff]  ;;  %v2063_v54 = vld [vmem:[#allocation3 + $0x78] ss:$20 sps:$4 sm:$0xff]  }
  0x30   :  { %1811 = vmatpush3.bf16.msra.mxu1 %v2026_v17  ;;  %1736 = vmatprep.subr.bf16.mxu0 %v2027_v18  ;;  %v2057_v45 = vld [vmem:[#allocation3 + $0x50] ss:$20 sps:$4 sm:$0xff]   ;;  %v217_v52 = vld [vmem:[%s2701_s2 + $0x98] sm:$0xff]  ;;  %v2070_v62 = vld [vmem:[#allocation3 + $0xac] ss:$20 sps:$4 sm:$0xff]  }
  0x31   :  { %1812 = vmatprep.subr.bf16.mxu1 %v2029_v20  ;;  %300 = vperm.xlu0 %2009, %v214_v44   ;;  %v2061_v46 = vld [vmem:[#allocation3 + $0x7c] ss:$20 sps:$4 sm:$0xff]   ;;  %v215_v48 = vld [vmem:[%s2701_s2 + $0x88] sm:$0xff]  ;;  %v2066_v59 = vld [vmem:[#allocation3 + $0x80] ss:$20 sps:$4 sm:$0xff]  }
  0x32   :  { %v2064_v50 = vld [vmem:[#allocation3 + $0x84] ss:$20 sps:$4 sm:$0xff]   ;;  %315 = vperm.xlu1 %2010, %v217_v52   ;;  %v2086_v55 = vld [vmem:[%s2699_s0 + $0x130] sm:$0xff]   ;;  %v2072_v6 = vld [vmem:[#allocation3 + $0xa8] ss:$20 sps:$4 sm:$0xff]  }
  0x33   :  { %1737 = vmatpush3.bf16.msra.mxu0 %v2028_v19  ;;  %v210_v53 = vld [vmem:[%s2701_s2 + $0x60] sm:$0xff]  ;;  %v211_v56 = vld [vmem:[%s2701_s2 + $0x68] sm:$0xff]  ;;  %v212_v58 = vld [vmem:[%s2701_s2 + $0x70] sm:$0xff] }
  0x34   :  { %1813 = vmatpush3.bf16.msra.mxu1 %v2030_v21  ;;  %1738 = vmatprep.subr.bf16.mxu0 %v2031_v22  ;;  %v2067_v57 = vld [vmem:[#allocation3 + $0xa4] ss:$20 sps:$4 sm:$0xff]   ;;  %v2069_v2 = vld [vmem:[#allocation3 + $0xa0] ss:$20 sps:$4 sm:$0xff]   ;;  %v2075_v11 = vld [vmem:[#allocation3 + $0xc8] ss:$20 sps:$4 sm:$0xff]  }
  0x35   :  { %1814 = vmatprep.subr.bf16.mxu1 %v2033_v24  ;;  %305 = vperm.xlu0 %2009, %v215_v48   ;;  %v2090_v60 = vld [vmem:[%s2699_s0 + $0x128] sm:$0xff]   ;;  %v213_v61 = vld [vmem:[%s2701_s2 + $0x78] sm:$0xff]  ;;  %v206_v63 = vld [vmem:[%s2701_s2 + $0x40] sm:$0xff] }
  0x36   :  { %285 = vperm.xlu1 %2010, %v211_v56   ;;  %v2094_v0 = vld [vmem:[%s2699_s0 + $0x120] sm:$0xff]   ;;  %v207_v1 = vld [vmem:[%s2701_s2 + $0x48] sm:$0xff]  ;;  %v208_v4 = vld [vmem:[%s2701_s2 + $0x50] sm:$0xff] }
  0x37   :  { %1739 = vmatpush3.bf16.msra.mxu0 %v2032_v23  ;;  %v2073_v3 = vld [vmem:[#allocation3 + $0xcc] ss:$20 sps:$4 sm:$0xff]   ;;  %v2098_v5 = vld [vmem:[%s2699_s0 + $0x118] sm:$0xff]   ;;  %v2078_v16 = vld [vmem:[#allocation3 + $0xd0] ss:$20 sps:$4 sm:$0xff]  }
  0x38   :  { %1815 = vmatpush3.bf16.msra.mxu1 %v2034_v25  ;;  %1740 = vmatprep.subr.bf16.mxu0 %v2035_v26  ;;  %v2076_v7 = vld [vmem:[#allocation3 + $0xd4] ss:$20 sps:$4 sm:$0xff]   ;;  %v202_v9 = vld [vmem:[%s2701_s2 + $0x20] sm:$0xff]  ;;  %v2085_v25 = vld [vmem:[#allocation3 + $0xf8] ss:$20 sps:$4 sm:$0xff]  }
  0x39   :  { %1816 = vmatprep.subr.bf16.mxu1 %v2037_v28  ;;  %280 = vperm.xlu0 %2009, %v210_v53   ;;  %v209_v8 = vld [vmem:[%s2701_s2 + $0x58] sm:$0xff]  ;;  %v2102_v10 = vld [vmem:[%s2699_s0 + $0x110] sm:$0xff]   ;;  %v203_v12 = vld [vmem:[%s2701_s2 + $0x28] sm:$0xff] }
  0x3a   :  { %295 = vperm.xlu1 %2010, %v213_v61   ;;  %v2079_v13 = vld [vmem:[#allocation3 + $0xf4] ss:$20 sps:$4 sm:$0xff]   ;;  %v2083_v17 = vld [vmem:[#allocation3 + $0xfc] ss:$20 sps:$4 sm:$0xff]   ;;  %v2099_v34 = vld [vmem:[#allocation3 + $0x14c] ss:$20 sps:$4 sm:$0xff]  }
  0x3b   :  { %1741 = vmatpush3.bf16.msra.mxu0 %v2036_v27  ;;  %v204_v14 = vld [vmem:[%s2701_s2 + $0x30] sm:$0xff]  ;;  %v2106_v15 = vld [vmem:[%s2699_s0 + $0x108] sm:$0xff]   ;;  %v205_v18 = vld [vmem:[%s2701_s2 + $0x38] sm:$0xff] }
  0x3c   :  { %1817 = vmatpush3.bf16.msra.mxu1 %v2038_v29  ;;  %1742 = vmatprep.subr.bf16.mxu0 %v2039_v30  ;;  %v198_v19 = vld [vmem:[%s2701_s2] sm:$0xff]  ;;  %v199_v22 = vld [vmem:[%s2701_s2 + $0x8] sm:$0xff]  ;;  %v200_v24 = vld [vmem:[%s2701_s2 + $0x10] sm:$0xff] }
  0x3d   :  { %1818 = vmatprep.subr.bf16.mxu1 %v2041_v32  ;;  %290 = vperm.xlu0 %2009, %v212_v58   ;;  %v2110_v20 = vld [vmem:[%s2699_s0 + $0x100] sm:$0xff]   ;;  %v201_v26 = vld [vmem:[%s2701_s2 + $0x18] sm:$0xff]  ;;  %v1219_v29 = vld [vmem:[%s2703_s4 + $0x88] sm:$0xff] }
  0x3e   :  { %265 = vperm.xlu1 %2010, %v207_v1   ;;  %v2081_v21 = vld [vmem:[#allocation3 + $0xf0] ss:$20 sps:$4 sm:$0xff]   ;;  %v2089_v30 = vld [vmem:[#allocation3 + $0x118] ss:$20 sps:$4 sm:$0xff]   ;;  %v2117_v1 = vld [vmem:[#allocation3 + $0x100] ss:$20 sps:$4 sm:$0xff]  }
  0x3f   :  { %1743 = vmatpush3.bf16.msra.mxu0 %v2040_v31  ;;  %v2087_v23 = vld [vmem:[#allocation3 + $0x11c] ss:$20 sps:$4 sm:$0xff]   ;;  %v2091_v27 = vld [vmem:[#allocation3 + $0x124] ss:$20 sps:$4 sm:$0xff]  }
  0x40   :  { %1819 = vmatpush3.bf16.msra.mxu1 %v2045_v35  ;;  %1919 = vmatprep.subr.bf16.mxu0 %v2082_v51  ;;  %v1218_v28 = vld [vmem:[%s2703_s4 + $0x80] sm:$0xff]  ;;  %v1220_v32 = vld [vmem:[%s2703_s4 + $0x90] sm:$0xff]  ;;  %v1221_v35 = vld [vmem:[%s2703_s4 + $0x98] sm:$0xff] }
  0x41   :  { %260 = vperm.xlu0 %2009, %v206_v63   ;;  %v2095_v31 = vld [vmem:[#allocation3 + $0x144] ss:$20 sps:$4 sm:$0xff]   ;;  %v1212_v48 = vld [vmem:[%s2703_s4 + $0x50] sm:$0xff]  ;;  %v1542_v63 = vld [vmem:[#allocation2] sm:$0x1] }
  0x42   :  { %851 = vmatmul.mubr.bf16.vlgmr.msra.gmra.mxu0 %v2042_v33  ;;  %275 = vperm.xlu1 %2010, %v209_v8   ;;  %v2093_v33 = vld [vmem:[#allocation3 + $0x120] ss:$20 sps:$4 sm:$0xff]   ;;  %v1215_v37 = vld [vmem:[%s2703_s4 + $0x68] sm:$0xff] }
  0x43   :  { %858 = vmatprep.mubr.bf16.mxu0 %v2049_v38  ;;  %964 = vmatmul.mubr.bf16.vlgmr.msra.gmra.mxu1 %v2046_v36  ;;  %v1214_v36 = vld [vmem:[%s2703_s4 + $0x60] sm:$0xff]  ;;  %v1207_v52 = vld [vmem:[%s2703_s4 + $0x28] sm:$0xff]  ;;  %v1209_v56 = vld [vmem:[%s2703_s4 + $0x38] sm:$0xff] }
  0x44   :  { %971 = vmatprep.mubr.bf16.mxu1 %v2052_v39  ;;  %1920 = vmatpush3.bf16.msra.mxu0 %v2082_v51  ;;  %v2097_v38 = vld [vmem:[#allocation3 + $0x140] ss:$20 sps:$4 sm:$0xff]   ;;  %v2111_v47 = vld [vmem:[#allocation3 + $0x10] ss:$20 sps:$4 sm:$0xff]   ;;  %v2112_v53 = vld [vmem:[#allocation3 + $0x38] ss:$20 sps:$4 sm:$0xff]  }
  0x45   :  { %1921 = vmatprep.subr.bf16.mxu0 %v2086_v55  ;;  %270 = vperm.xlu0 %2009, %v208_v4   ;;  %v2103_v39 = vld [vmem:[#allocation3 + $0x16c] ss:$20 sps:$4 sm:$0xff]  }
  0x46   :  { %245 = vperm.xlu1 %2010, %v203_v12   ;;  %v1210_v44 = vld [vmem:[%s2703_s4 + $0x40] sm:$0xff]  ;;  %v1203_v58 = vld [vmem:[%s2703_s4 + $0x8] sm:$0xff]  ;;  %v1204_v61 = vld [vmem:[%s2703_s4 + $0x10] sm:$0xff] }
  0x47   :  { %v1206_v51 = vld [vmem:[%s2703_s4 + $0x20] sm:$0xff]  ;;  %v2120_v4 = vld [vmem:[#allocation3 + $0x178] ss:$20 sps:$4 sm:$0xff]  }
  0x48   :  { %1922 = vmatpush3.bf16.msra.mxu0 %v2086_v55  ;;  %v1208_v55 = vld [vmem:[%s2703_s4 + $0x30] sm:$0xff] }
  0x49   :  { %1923 = vmatprep.subr.bf16.mxu0 %v2090_v60  ;;  %240 = vperm.xlu0 %2009, %v202_v9  }
  0x4a   :  { %859 = vmatmul.mubr.bf16.gmra.mxu0 %v2051_v40  ;;  %255 = vperm.xlu1 %2010, %v205_v18   ;;  %v1216_v40 = vld [vmem:[%s2703_s4 + $0x70] sm:$0xff] }
  0x4b   :  { %866 = vmatprep.mubr.bf16.mxu0 %v2055_v41  ;;  %972 = vmatmul.mubr.bf16.gmra.mxu1 %v2054_v42  ;;  %v2101_v41 = vld [vmem:[#allocation3 + $0x148] ss:$20 sps:$4 sm:$0xff]  }
  0x4c   :  { %979 = vmatprep.mubr.bf16.mxu1 %v2058_v43  ;;  %1924 = vmatpush3.bf16.msra.mxu0 %v2090_v60  ;;  %v1217_v42 = vld [vmem:[%s2703_s4 + $0x78] sm:$0xff]  ;;  %v2115_v60 = vld [vmem:[#allocation3 + $0xb0] ss:$20 sps:$4 sm:$0xff]  }
  0x4d   :  { %1925 = vmatprep.subr.bf16.mxu0 %v2094_v0  ;;  %250 = vperm.xlu0 %2009, %v204_v14   ;;  %v2107_v43 = vld [vmem:[#allocation3 + $0x174] ss:$20 sps:$4 sm:$0xff]  }
  0x4e   :  { %225 = vperm.xlu1 %2010, %v199_v22  }
  0x50   :  { %1926 = vmatpush3.bf16.msra.mxu0 %v2094_v0  ;;  %v2116_v0 = vld [vmem:[#allocation3 + $0xd8] ss:$20 sps:$4 sm:$0xff]  }
  0x51   :  { %1927 = vmatprep.subr.bf16.mxu0 %v2098_v5  ;;  %220 = vperm.xlu0 %2009, %v198_v19  }
  0x52   :  { %867 = vmatmul.mubr.bf16.gmra.mxu0 %v2057_v45  ;;  %235 = vperm.xlu1 %2010, %v201_v26   ;;  %v1211_v45 = vld [vmem:[%s2703_s4 + $0x48] sm:$0xff] }
  0x53   :  { %874 = vmatprep.mubr.bf16.mxu0 %v2061_v46  ;;  %980 = vmatmul.mubr.bf16.gmra.mxu1 %v2060_v49  ;;  %v2105_v46 = vld [vmem:[#allocation3 + $0x168] ss:$20 sps:$4 sm:$0xff]   ;;  %v2109_v49 = vld [vmem:[#allocation3 + $0x170] ss:$20 sps:$4 sm:$0xff]  }
  0x54   :  { %987 = vmatprep.mubr.bf16.mxu1 %v2064_v50  ;;  %1928 = vmatpush3.bf16.msra.mxu0 %v2098_v5  ;;  %v1213_v50 = vld [vmem:[%s2703_s4 + $0x58] sm:$0xff] }
  0x55   :  { %1929 = vmatprep.subr.bf16.mxu0 %v2102_v10  ;;  %230 = vperm.xlu0 %2009, %v200_v24  }
  0x56   :  { %1309 = vperm.xlu1 %2010, %v1219_v29  }
  0x58   :  { %1930 = vmatpush3.bf16.msra.mxu0 %v2102_v10 }
  0x59   :  { %1931 = vmatprep.subr.bf16.mxu0 %v2106_v15  ;;  %1304 = vperm.xlu0 %2009, %v1218_v28  }
  0x5a   :  { %875 = vmatmul.mubr.bf16.gmra.mxu0 %v2063_v54  ;;  %1319 = vperm.xlu1 %2010, %v1221_v35   ;;  %v2113_v54 = vld [vmem:[#allocation3 + $0x60] ss:$20 sps:$4 sm:$0xff]  }
  0x5b   :  { %882 = vmatprep.mubr.bf16.mxu0 %v2067_v57  ;;  %988 = vmatmul.mubr.bf16.gmra.mxu1 %v2066_v59  ;;  %v1202_v57 = vld [vmem:[%s2703_s4] sm:$0xff] }
  0x5c   :  { %995 = vmatprep.mubr.bf16.mxu1 %v2070_v62  ;;  %1932 = vmatpush3.bf16.msra.mxu0 %v2106_v15  ;;  %v2114_v59 = vld [vmem:[#allocation3 + $0x88] ss:$20 sps:$4 sm:$0xff]  }
  0x5d   :  { %1933 = vmatprep.subr.bf16.mxu0 %v2110_v20  ;;  %1314 = vperm.xlu0 %2009, %v1220_v32   ;;  %v1205_v62 = vld [vmem:[%s2703_s4 + $0x18] sm:$0xff] }
  0x5e   :  { %1289 = vperm.xlu1 %2010, %v1215_v37  }
  0x60   :  { %1934 = vmatpush3.bf16.msra.mxu0 %v2110_v20 }
  0x61   :  { %1284 = vperm.xlu0 %2009, %v1214_v36  }
  0x62   :  { %883 = vmatmul.mubr.bf16.gmra.mxu0 %v2069_v2  ;;  %1299 = vperm.xlu1 %2010, %v1217_v42   ;;  %v2118_v2 = vld [vmem:[#allocation3 + $0x128] ss:$20 sps:$4 sm:$0xff]  }
  0x63   :  { %890 = vmatprep.mubr.bf16.mxu0 %v2073_v3  ;;  %996 = vmatmul.mubr.bf16.gmra.mxu1 %v2072_v6  ;;  %v2119_v3 = vld [vmem:[#allocation3 + $0x150] ss:$20 sps:$4 sm:$0xff]  }
  0x64   :  { %1003 = vmatprep.mubr.bf16.mxu1 %v2076_v7 }
  0x65   :  { %1294 = vperm.xlu0 %2009, %v1216_v40  }
  0x66   :  { %1269 = vperm.xlu1 %2010, %v1211_v45  }
  0x69   :  { %1264 = vperm.xlu0 %2009, %v1210_v44  }
  0x6a   :  { %891 = vmatmul.mubr.bf16.gmra.mxu0 %v2075_v11  ;;  %1279 = vperm.xlu1 %2010, %v1213_v50  }
  0x6b   :  { %898 = vmatprep.mubr.bf16.mxu0 %v2079_v13  ;;  %1004 = vmatmul.mubr.bf16.gmra.mxu1 %v2078_v16 }
  0x6c   :  { %1011 = vmatprep.mubr.bf16.mxu1 %v2083_v17 }
  0x6d   :  { %1274 = vperm.xlu0 %2009, %v1212_v48  }
  0x6e   :  { %1249 = vperm.xlu1 %2010, %v1207_v52  }
  0x71   :  { %1244 = vperm.xlu0 %2009, %v1206_v51  }
  0x72   :  { %899 = vmatmul.mubr.bf16.gmra.mxu0 %v2081_v21  ;;  %1259 = vperm.xlu1 %2010, %v1209_v56  }
  0x73   :  { %906 = vmatprep.mubr.bf16.mxu0 %v2087_v23  ;;  %1012 = vmatmul.mubr.bf16.gmra.mxu1 %v2085_v25 }
  0x74   :  { %1019 = vmatprep.mubr.bf16.mxu1 %v2091_v27 }
  0x75   :  { %1254 = vperm.xlu0 %2009, %v1208_v55  }
  0x76   :  { %1229 = vperm.xlu1 %2010, %v1203_v58  }
  0x79   :  { %1224 = vperm.xlu0 %2009, %v1202_v57  }
  0x7a   :  { %907 = vmatmul.mubr.bf16.gmra.mxu0 %v2089_v30  ;;  %1239 = vperm.xlu1 %2010, %v1205_v62  }
  0x7b   :  { %914 = vmatprep.mubr.bf16.mxu0 %v2095_v31  ;;  %1020 = vmatmul.mubr.bf16.gmra.mxu1 %v2093_v33 }
  0x7c   :  { %1027 = vmatprep.mubr.bf16.mxu1 %v2099_v34 }
  0x7d   :  { %1234 = vperm.xlu0 %2009, %v1204_v61  }
  0x81   :  { %1545 = vperm.xlu0 %2009, %v1542_v63  }
  0x82   :  { %915 = vmatmul.mubr.bf16.gmra.mxu0 %v2097_v38 }
  0x83   :  { %922 = vmatprep.mubr.bf16.mxu0 %v2103_v39  ;;  %1028 = vmatmul.mubr.bf16.gmra.mxu1 %v2101_v41 }
  0x84   :  { %1035 = vmatprep.mubr.bf16.mxu1 %v2107_v43 }
  0x8a   :  { %923 = vmatmul.mubr.bf16.gmra.mxu0 %v2105_v46 }
  0x8b   :  { %1935 = vmatprep.mubr.bf16.mxu0 %v2111_v47  ;;  %1036 = vmatmul.mubr.bf16.gmra.mxu1 %v2109_v49 }
  0x92   :  { %1936 = vmatmul.mubr.bf16.vlgmr.msra.gmra.mxu0 %v2112_v53 }
  0x93   :  { %1939 = vmatprep.mubr.bf16.mxu0 %v2113_v54  ;;  %v2121_v54 = vld [vmem:[#allocation6] sm:$0xff]  }
  0x94   :  { %1965 = vmatprep.mubr.msk.bf16.mxu1 %vm1372_vm0, %v2121_v54 }
  0x9a   :  { %1940 = vmatmul.mubr.bf16.gmra.mxu0 %v2114_v59 }
  0x9b   :  { %1943 = vmatprep.mubr.bf16.mxu0 %v2115_v60 }
  0xa2   :  { %1944 = vmatmul.mubr.bf16.gmra.mxu0 %v2116_v0 }
  0xa3   :  { %1947 = vmatprep.mubr.bf16.mxu0 %v2117_v1 }
  0xa5   :  { %v2502_v6 = vpop.permute.xlu1 %310 }
  0xa6   :  { %2708 = vst [vmem:[#allocation13_spill] sm:$0xff] %v2502_v6 }
  0xaa   :  { %1948 = vmatmul.mubr.bf16.gmra.mxu0 %v2118_v2 }
  0xab   :  { %1951 = vmatprep.mubr.bf16.mxu0 %v2119_v3 }
  0xac   :  { %v2500_v5 = vpop.permute.xlu0 %300 }
  0xad   :  { %2707 = vst [vmem:[#allocation12_spill] sm:$0xff] %v2500_v5  ;;  %v2506_v8 = vpop.permute.xlu1 %315 }
  0xae   :  { %2710 = vst [vmem:[#allocation15_spill] sm:$0xff] %v2506_v8 }
  0xb0   :  { %v2504_v7 = vpop.permute.xlu0 %305 }
  0xb1   :  { %2709 = vst [vmem:[#allocation14_spill] sm:$0xff] %v2504_v7  ;;  %v2510_v10 = vpop.permute.xlu1 %285 }
  0xb2   :  { %1952 = vmatmul.mubr.bf16.gmra.mxu0 %v2120_v4 }
  0xb4   :  { %v2508_v9 = vpop.permute.xlu0 %280 }
  0xb5   :  { %v2514_v12 = vpop.permute.xlu1 %295 }
  0xb6   :  { %2712 = vst [vmem:[#allocation17_spill] sm:$0xff] %v2514_v12 }
  0xb8   :  { %v2512_v11 = vpop.permute.xlu0 %290 }
  0xb9   :  { %2711 = vst [vmem:[#allocation16_spill] sm:$0xff] %v2512_v11  ;;  %v2518_v14 = vpop.permute.xlu1 %265 }
  0xbc   :  { %v2516_v13 = vpop.permute.xlu0 %260 }
  0xbd   :  { %v2522_v16 = vpop.permute.xlu1 %275 }
  0xc0   :  { %v2520_v15 = vpop.permute.xlu0 %270 }
  0xc1   :  { %v246_v18 = vpop.permute.xlu1 %245 }
  0xc4   :  { %v241_v17 = vpop.permute.xlu0 %240 }
  0xc5   :  { %v2524_v21 = vpop.permute.xlu1 %255 }
  0xc8   :  { %v251_v19 = vpop.permute.xlu0 %250 }
  0xc9   :  { %v226_v31 = vpop.permute.xlu1 %225 }
  0xcc   :  { %v221_v23 = vpop.permute.xlu0 %220 }
  0xcd   :  { %v236_v49 = vpop.permute.xlu1 %235 }
  0xd0   :  { %v231_v40 = vpop.permute.xlu0 %230 }
 0x102   :  { %v1744_v20 = vpop.f32.mrf.mxu0 }
 0x103   :  { %v1820_v25 = vpop.f32.mrf.mxu1 }
 0x104   :  { %v1745_v22 = vpop.f32.mrf.mxu0 }
 0x105   :  { %v1746_v24 = vadd.f32 %v1745_v22, %v1744_v20  ;;  %v1821_v28 = vpop.f32.mrf.mxu1 }
 0x106   :  { %v1747_v26 = vpop.f32.mrf.mxu0  ;;  %v1822_v29 = vadd.f32 %v1821_v28, %v1820_v25 }
 0x107   :  { %v853_v27 = vadd.f32 %v1746_v24, %v221_v23  ;;  %v1823_v33 = vpop.f32.mrf.mxu1 }
 0x108   :  { %v1748_v30 = vpop.f32.mrf.mxu0 }
 0x109   :  { %v1749_v32 = vadd.f32 %v1748_v30, %v1747_v26  ;;  %v2526_v35 = vadd.f32 %v1822_v29, %v853_v27  ;;  %v1824_v37 = vpop.f32.mrf.mxu1 }
 0x10a   :  { %v1750_v34 = vpop.f32.mrf.mxu0  ;;  %v1825_v38 = vadd.f32 %v1824_v37, %v1823_v33 }
 0x10b   :  { %v856_v36 = vadd.f32 %v1749_v32, %v226_v31  ;;  %v1826_v42 = vpop.f32.mrf.mxu1 }
 0x10c   :  { %v1751_v39 = vpop.f32.mrf.mxu0 }
 0x10d   :  { %v1752_v41 = vadd.f32 %v1751_v39, %v1750_v34  ;;  %v2528_v44 = vadd.f32 %v1825_v38, %v856_v36  ;;  %v1827_v46 = vpop.f32.mrf.mxu1 }
 0x10e   :  { %v1753_v43 = vpop.f32.mrf.mxu0  ;;  %v1828_v47 = vadd.f32 %v1827_v46, %v1826_v42 }
 0x10f   :  { %v861_v45 = vadd.f32 %v1752_v41, %v231_v40  ;;  %v1829_v51 = vpop.f32.mrf.mxu1 }
 0x110   :  { %v1754_v48 = vpop.f32.mrf.mxu0 }
 0x111   :  { %v1755_v50 = vadd.f32 %v1754_v48, %v1753_v43  ;;  %v2530_v53 = vadd.f32 %v1828_v47, %v861_v45  ;;  %v1830_v56 = vpop.f32.mrf.mxu1 }
 0x112   :  { %v1756_v52 = vpop.f32.mrf.mxu0  ;;  %v1831_v57 = vadd.f32 %v1830_v56, %v1829_v51 }
 0x113   :  { %v864_v55 = vadd.f32 %v1755_v50, %v236_v49  ;;  %v1832_v60 = vpop.f32.mrf.mxu1 }
 0x114   :  { %v1757_v58 = vpop.f32.mrf.mxu0 }
 0x115   :  { %v1758_v59 = vadd.f32 %v1757_v58, %v1756_v52  ;;  %v2533_v62 = vadd.f32 %v1831_v57, %v864_v55  ;;  %v1833_v0 = vpop.f32.mrf.mxu1 }
 0x116   :  { %v1759_v61 = vpop.f32.mrf.mxu0  ;;  %v1834_v1 = vadd.f32 %v1833_v0, %v1832_v60 }
 0x117   :  { %v869_v63 = vadd.f32 %v1758_v59, %v241_v17  ;;  %v1835_v4 = vpop.f32.mrf.mxu1 }
 0x118   :  { %v1760_v2 = vpop.f32.mrf.mxu0 }
 0x119   :  { %v1761_v3 = vadd.f32 %v1760_v2, %v1759_v61  ;;  %v2535_v22 = vadd.f32 %v1834_v1, %v869_v63  ;;  %v1836_v24 = vpop.f32.mrf.mxu1 }
 0x11a   :  { %v1762_v20 = vpop.f32.mrf.mxu0  ;;  %v1837_v25 = vadd.f32 %v1836_v24, %v1835_v4 }
 0x11b   :  { %v872_v23 = vadd.f32 %v1761_v3, %v246_v18  ;;  %v1838_v28 = vpop.f32.mrf.mxu1 }
 0x11c   :  { %v1763_v26 = vpop.f32.mrf.mxu0 }
 0x11d   :  { %v1764_v27 = vadd.f32 %v1763_v26, %v1762_v20  ;;  %v2537_v30 = vadd.f32 %v1837_v25, %v872_v23  ;;  %v1839_v32 = vpop.f32.mrf.mxu1 }
 0x11e   :  { %v1765_v29 = vpop.f32.mrf.mxu0  ;;  %v1840_v17 = vadd.f32 %v1839_v32, %v1838_v28 }
 0x11f   :  { %v877_v31 = vadd.f32 %v1764_v27, %v251_v19  ;;  %v1841_v36 = vpop.f32.mrf.mxu1 }
 0x120   :  { %v1766_v33 = vpop.f32.mrf.mxu0 }
 0x121   :  { %v1767_v34 = vadd.f32 %v1766_v33, %v1765_v29  ;;  %v2539_v38 = vadd.f32 %v1840_v17, %v877_v31  ;;  %v1842_v39 = vpop.f32.mrf.mxu1 }
 0x122   :  { %v1768_v37 = vpop.f32.mrf.mxu0  ;;  %v1843_v6 = vadd.f32 %v1842_v39, %v1841_v36 }
 0x123   :  { %v2543_v41 = vpop.f32.mrf.mxu1  ;;  %v880_v5 = vadd.f32 %v1767_v34, %v2524_v21 }
 0x124   :  { %v1769_v40 = vpop.f32.mrf.mxu0 }
 0x125   :  { %v2541_v18 = vadd.f32 %v1769_v40, %v1768_v37  ;;  %v2545_v43 = vpop.f32.mrf.mxu1 }
 0x126   :  { %v1771_v42 = vpop.f32.mrf.mxu0 }
 0x127   :  { %v2549_v19 = vpop.f32.mrf.mxu1 }
 0x128   :  { %v1772_v45 = vpop.f32.mrf.mxu0 }
 0x129   :  { %v2547_v46 = vadd.f32 %v1772_v45, %v1771_v42  ;;  %v2551_v48 = vpop.f32.mrf.mxu1 }
 0x12a   :  { %v1774_v47 = vpop.f32.mrf.mxu0 }
 0x12b   :  { %v1850_v51 = vpop.f32.mrf.mxu1 }
 0x12c   :  { %v1775_v49 = vpop.f32.mrf.mxu0 }
 0x12d   :  { %v1776_v50 = vadd.f32 %v1775_v49, %v1774_v47  ;;  %v1851_v54 = vpop.f32.mrf.mxu1 }
 0x12e   :  { %v1777_v52 = vpop.f32.mrf.mxu0 }
 0x12f   :  { %v1853_v57 = vpop.f32.mrf.mxu1 }
 0x130   :  { %v1778_v55 = vpop.f32.mrf.mxu0 }
 0x131   :  { %v1779_v56 = vadd.f32 %v1778_v55, %v1777_v52  ;;  %v1854_v59 = vpop.f32.mrf.mxu1 }
 0x132   :  { %v1780_v58 = vpop.f32.mrf.mxu0  ;;  %v1855_v39 = vadd.f32 %v1854_v59, %v1853_v57 }
 0x133   :  { %v2555_v63 = vpop.f32.mrf.mxu1 }
 0x134   :  { %v1781_v60 = vpop.f32.mrf.mxu0 }
 0x135   :  { %v2553_v61 = vadd.f32 %v1781_v60, %v1780_v58  ;;  %v2559_v1 = vpop.f32.mrf.mxu1 }
 0x136   :  { %v2557_v0 = vpop.f32.mrf.mxu0 }
 0x137   :  { %v2563_v3 = vpop.f32.mrf.mxu1 }
 0x138   :  { %v2561_v2 = vpop.f32.mrf.mxu0  ;;  %2713 = vst [vmem:[#allocation18_spill] sm:$0xff] %v2563_v3  ;;  %v993_v3 = vadd.f32 %v1843_v6, %v880_v5  ;;  %v885_v6 = vadd.f32 %v2541_v18, %v2516_v13 }
 0x139   :  { %v2569_v23 = vpop.f32.mrf.mxu1 }
 0x13a   :  { %v2565_v4 = vpop.f32.mrf.mxu0  ;;  %2714 = vst [vmem:[#allocation19_spill] sm:$0xff] %v2569_v23 }
 0x13b   :  { %v2575_v26 = vpop.f32.mrf.mxu1 }
 0x13c   :  { %v2567_v20 = vpop.f32.mrf.mxu0  ;;  %2715 = vst [vmem:[#allocation20_spill] sm:$0xff] %v2575_v26 }
 0x13d   :  { %v2581_v29 = vpop.f32.mrf.mxu1 }
 0x13e   :  { %v2571_v24 = vpop.f32.mrf.mxu0  ;;  %2716 = vst [vmem:[#allocation21_spill] sm:$0xff] %v2581_v29 }
 0x13f   :  { %v2587_v17 = vpop.f32.mrf.mxu1 }
 0x140   :  { %v2573_v25 = vpop.f32.mrf.mxu0  ;;  %2717 = vst [vmem:[#allocation22_spill] sm:$0xff] %v2587_v17 }
 0x141   :  { %v2593_v40 = vpop.f32.mrf.mxu1 }
 0x142   :  { %v2577_v27 = vpop.f32.mrf.mxu0  ;;  %2718 = vst [vmem:[#allocation23_spill] sm:$0xff] %v2593_v40 }
 0x143   :  { %v2599_v47 = vpop.f32.mrf.mxu1 }
 0x144   :  { %v2579_v28 = vpop.f32.mrf.mxu0  ;;  %2719 = vst [vmem:[#allocation24_spill] sm:$0xff] %v2599_v47 }
 0x145   :  { %v2601_v55 = vpop.f32.mrf.mxu1 }
 0x146   :  { %v2583_v31 = vpop.f32.mrf.mxu0  ;;  %2720 = vst [vmem:[#allocation25_spill] sm:$0xff] %v2601_v55 }
 0x147   :  { %v2608_v29 = vpop.f32.mrf.mxu1 }
 0x148   :  { %v2585_v32 = vpop.f32.mrf.mxu0 }
 0x14a   :  { %v2589_v33 = vpop.f32.mrf.mxu0 }
 0x14c   :  { %v2591_v37 = vpop.f32.mrf.mxu0 }
 0x14e   :  { %v2595_v42 = vpop.f32.mrf.mxu0 }
 0x150   :  { %v2597_v45 = vpop.f32.mrf.mxu0 }
 0x152   :  { %v1937_v49 = vpop.f32.mrf.mxu0 }
 0x153   :  { %v1087_v60 = vadd.f32 %v1937_v49, %v2530_v53  ;;  %v2610_v53 = vpop.f32.mrf.mxu1 }
 0x154   :  { %v1078_v52 = vpop.f32.mrf.mxu0 }
 0x155   :  { %v1079_v40 = vadd.f32 %v1078_v52, %v2526_v35  ;;  %v1852_v35 = vadd.f32 %v1851_v54, %v1850_v51  ;;  %v1788_v52 = vadd.f32 %v2567_v20, %v2565_v4 }
 0x156   :  { %v1938_v58 = vpop.f32.mrf.mxu0 }
 0x157   :  { %v1090_v7 = vadd.f32 %v1938_v58, %v2533_v62 }
 0x158   :  { %v1081_v8 = vpop.f32.mrf.mxu0 }
 0x159   :  { %v1158_v17 = vmax.f32 %v1087_v60, %v1090_v7  ;;  %v1082_v12 = vadd.f32 %v1081_v8, %v2528_v44  ;;  %v893_v7 = vadd.f32 %v1776_v50, %v2520_v15  ;;  %v896_v8 = vadd.f32 %v1779_v56, %v2522_v16 }
 0x15a   :  { %v1941_v47 = vpop.f32.mrf.mxu0  ;;  %v888_v15 = vadd.f32 %v2547_v46, %v2518_v14  ;;  %v1849_v16 = vadd.f32 %v2551_v48, %v2549_v19  ;;  %v1785_v48 = vadd.f32 %v2561_v2, %v2557_v0  ;;  %v1800_v60 = vadd.f32 %v2591_v37, %v2589_v33  ;;  %v2721_v33 = vld [vmem:[#allocation18_spill] sm:$0xff]  ;;  %v2722_v37 = vld [vmem:[#allocation19_spill] sm:$0xff] }
 0x15b   :  { %v1157_v26 = vmax.f32 %v1079_v40, %v1082_v12  ;;  %v1168_v55 = vmax.f32 %v1158_v17, 0.0  ;;  %v1103_v21 = vadd.f32 %v1941_v47, %v2539_v38  ;;  %v1846_v38 = vadd.f32 %v2545_v43, %v2543_v41 }
 0x15c   :  { %v1094_v11 = vpop.f32.mrf.mxu0  ;;  %v1006_v54 = vadd.f32 %v1852_v35, %v893_v7  ;;  %v1001_v41 = vadd.f32 %v1849_v16, %v888_v15  ;;  %v901_v7 = vadd.f32 %v2553_v61, %v2508_v9  ;;  %v1794_v0 = vadd.f32 %v2579_v28, %v2577_v27  ;;  %v2723_v35 = vld [vmem:[#allocation16_spill] sm:$0xff]  ;;  %v2725_v61 = vld [vmem:[#allocation21_spill] sm:$0xff] }
 0x15d   :  { %v1167_v23 = vmax.f32 %v1157_v26, 0.0  ;;  %v1095_v12 = vadd.f32 %v1094_v11, %v2535_v22  ;;  %v998_v57 = vadd.f32 %v1846_v38, %v885_v6  ;;  %v1797_v2 = vadd.f32 %v2585_v32, %v2583_v31  ;;  %v2724_v9 = vld [vmem:[#allocation20_spill] sm:$0xff]  ;;  %v2726_v27 = vld [vmem:[#allocation17_spill] sm:$0xff]  ;;  %v2728_v31 = vld [vmem:[#allocation23_spill] sm:$0xff] }
 0x15e   :  { %v1942_v62 = vpop.f32.mrf.mxu0  ;;  %v2731_v38 = vld [vmem:[#allocation12_spill] sm:$0xff]  ;;  %v2733_v16 = vld [vmem:[#allocation25_spill] sm:$0xff] }
 0x15f   :  { %v1106_v34 = vadd.f32 %v1942_v62, %v993_v3  ;;  %v2613_v36 = vpack.c.bf16 %v1168_v55, %v1167_v23  ;;  %v1874_v3 = vpop.f32.mrf.mxu1  ;;  %v1791_v55 = vadd.f32 %v2573_v25, %v2571_v24  ;;  %v1803_v62 = vadd.f32 %v2597_v45, %v2595_v42  ;;  %v2732_v15 = vld [vmem:[#allocation24_spill] sm:$0xff] }
 0x160   :  { %v1097_v44 = vpop.f32.mrf.mxu0  ;;  %v1858_v24 = vadd.f32 %v2559_v1, %v2555_v63  ;;  %v904_v25 = vadd.f32 %v1785_v48, %v2510_v10  ;;  %v1861_v42 = vadd.f32 %v2722_v37, %v2721_v33  ;;  %v2730_v1 = vld [vmem:[#allocation15_spill] sm:$0xff]  ;;  %v2125_v33 = vld [vmem:[#allocation6 + $0x20] sm:$0xff]  }
 0x161   :  { %v1160_v17 = vmax.f32 %v1103_v21, %v1106_v34  ;;  %v1098_v5 = vadd.f32 %v1097_v44, %v2537_v30  ;;  %v1009_v30 = vadd.f32 %v1855_v39, %v896_v8  ;;  %v1875_v56 = vpop.f32.mrf.mxu1  ;;  %v909_v8 = vadd.f32 %v1788_v52, %v2723_v35  ;;  %v2727_v39 = vld [vmem:[#allocation22_spill] sm:$0xff] }
 0x162   :  { %v1945_v23 = vpop.f32.mrf.mxu0  ;;  %v1864_v44 = vadd.f32 %v2725_v61, %v2724_v9  ;;  %v912_v28 = vadd.f32 %v1791_v55, %v2726_v27  ;;  %v1867_v32 = vadd.f32 %v2728_v31, %v2727_v39  ;;  %v1876_v63 = vadd.f32 %v1875_v56, %v1874_v3  ;;  %v2126_v37 = vld [vmem:[#allocation6 + $0x28] sm:$0xff]   ;;  %v1305_v9 = vpop.permute.xlu0 %1304 }
 0x163   :  { %v1159_v50 = vmax.f32 %v1095_v12, %v1098_v5  ;;  %v1170_v11 = vmax.f32 %v1160_v17, 0.0  ;;  %v1119_v18 = vadd.f32 %v1945_v23, %v1006_v54  ;;  %v1877_v47 = vpop.f32.mrf.mxu1  ;;  %v2729_v17 = vld [vmem:[#allocation13_spill] sm:$0xff]  ;;  %v928_v10 = vadd.f32 %v1803_v62, %v2730_v1 }
 0x164   :  { %v1110_v51 = vpop.f32.mrf.mxu0  ;;  %v925_v5 = vadd.f32 %v1800_v60, %v2729_v17  ;;  %v917_v23 = vadd.f32 %v1794_v0, %v2731_v38  ;;  %v2208_v35 = vmov 0.0  }
 0x165   :  { %v1169_v22 = vmax.f32 %v1159_v50, 0.0  ;;  %v1111_v40 = vadd.f32 %v1110_v51, %v998_v57  ;;  %v1878_v4 = vpop.f32.mrf.mxu1  ;;  %v1870_v50 = vadd.f32 %v2733_v16, %v2732_v15  ;;  %v2734_v51 = vld [vmem:[#allocation14_spill] sm:$0xff]  ;;  %v1014_v57 = vadd.f32 %v1858_v24, %v901_v7  ;;  %1985 = vmatprep.subr.bf16.mxu0 %v2208_v35  ;;  %1995 = vmatprep.mubr.msk.bf16.mxu0 %vm2209_vm1, %v2208_v35 }
 0x166   :  { %v1946_v13 = vpop.f32.mrf.mxu0  ;;  %v1879_v6 = vadd.f32 %v1878_v4, %v1877_v47  ;;  %v1038_v3 = vadd.f32 %v1876_v63, %v925_v5 }
 0x167   :  { %v1122_v59 = vadd.f32 %v1946_v13, %v1009_v30  ;;  %v2627_v43 = vpack.c.bf16 %v1170_v11, %v1169_v22  ;;  %v920_v11 = vadd.f32 %v1797_v2, %v2734_v51  ;;  %v1873_v22 = vadd.f32 %v2610_v53, %v2608_v29 }
 0x168   :  { %v1113_v26 = vpop.f32.mrf.mxu0  ;;  %v1017_v30 = vadd.f32 %v1861_v42, %v904_v25  ;;  %v1041_v56 = vadd.f32 %v1879_v6, %v928_v10  ;;  %v2127_v42 = vld [vmem:[#allocation6 + $0x30] sm:$0xff]  }
 0x169   :  { %v1162_v14 = vmax.f32 %v1119_v18, %v1122_v59  ;;  %v1114_v46 = vadd.f32 %v1113_v26, %v1001_v41  ;;  %v1025_v18 = vadd.f32 %v1867_v32, %v912_v28  ;;  %v1022_v41 = vadd.f32 %v1864_v44, %v909_v8  ;;  %v1310_v8 = vpop.permute.xlu1 %1309  ;;  %v1315_v28 = vpop.permute.xlu0 %1314 }
 0x16a   :  { %v1949_v19 = vpop.f32.mrf.mxu0  ;;  %v1030_v26 = vadd.f32 %v1870_v50, %v917_v23 }
 0x16b   :  { %v1161_v49 = vmax.f32 %v1111_v40, %v1114_v46  ;;  %v1172_v21 = vmax.f32 %v1162_v14, 0.0  ;;  %v1033_v14 = vadd.f32 %v1873_v22, %v920_v11  ;;  %v1135_v52 = vadd.f32 %v1949_v19, %v1022_v41  ;;  %v2122_v19 = vld [vmem:[#allocation6 + $0x8] sm:$0xff]  }
 0x16c   :  { %v1126_v58 = vpop.f32.mrf.mxu0 }
 0x16d   :  { %v1171_v34 = vmax.f32 %v1161_v49, 0.0  ;;  %v1127_v46 = vadd.f32 %v1126_v58, %v1014_v57  ;;  %v2123_v58 = vld [vmem:[#allocation6 + $0x10] sm:$0xff]   ;;  %v1320_v44 = vpop.permute.xlu1 %1319  ;;  %v1285_v17 = vpop.permute.xlu0 %1284 }
 0x16e   :  { %v1950_v20 = vpop.f32.mrf.mxu0 }
 0x16f   :  { %v1199_v45 = vpack.c.bf16 %v1172_v21, %v1171_v34  ;;  %v1138_v47 = vadd.f32 %v1950_v20, %v1025_v18  ;;  %v2124_v20 = vld [vmem:[#allocation6 + $0x18] sm:$0xff]  }
 0x170   :  { %v1129_v12 = vpop.f32.mrf.mxu0 }
 0x171   :  { %v1130_v59 = vadd.f32 %v1129_v12, %v1017_v30  ;;  %v1164_v21 = vmax.f32 %v1135_v52, %v1138_v47  ;;  %v1290_v32 = vpop.permute.xlu1 %1289  ;;  %v1295_v6 = vpop.permute.xlu0 %1294 }
 0x172   :  { %v1953_v54 = vpop.f32.mrf.mxu0 }
 0x173   :  { %v1151_v48 = vadd.f32 %v1953_v54, %v1038_v3  ;;  %v1163_v60 = vmax.f32 %v1127_v46, %v1130_v59  ;;  %v1174_v4 = vmax.f32 %v1164_v21, 0.0 }
 0x174   :  { %v1142_v13 = vpop.f32.mrf.mxu0 }
 0x175   :  { %v1143_v29 = vadd.f32 %v1142_v13, %v1030_v26  ;;  %v1173_v7 = vmax.f32 %v1163_v60, 0.0  ;;  %v1300_v1 = vpop.permute.xlu1 %1299  ;;  %v1265_v50 = vpop.permute.xlu0 %1264 }
 0x176   :  { %v1954_v40 = vpop.f32.mrf.mxu0 }
 0x177   :  { %v1154_v49 = vadd.f32 %v1954_v40, %v1041_v56  ;;  %v1200_v25 = vpack.c.bf16 %v1174_v4, %v1173_v7 }
 0x178   :  { %v1145_v55 = vpop.f32.mrf.mxu0 }
 0x179   :  { %v1166_v53 = vmax.f32 %v1151_v48, %v1154_v49  ;;  %v1146_v62 = vadd.f32 %v1145_v55, %v1033_v14  ;;  %v1270_v15 = vpop.permute.xlu1 %1269  ;;  %v1275_v30 = vpop.permute.xlu0 %1274 }
 0x17b   :  { %v1165_v34 = vmax.f32 %v1143_v29, %v1146_v62  ;;  %v1176_v0 = vmax.f32 %v1166_v53, 0.0 }
 0x17d   :  { %v1175_v2 = vmax.f32 %v1165_v34, 0.0  ;;  %v1280_v22 = vpop.permute.xlu1 %1279  ;;  %v1245_v3 = vpop.permute.xlu0 %1244 }
 0x17f   :  { %v1201_v24 = vpack.c.bf16 %v1176_v0, %v1175_v2 }
 0x181   :  { %1955 = vmatprep.subr.bf16.mxu1 %v1201_v24  ;;  %v1250_v18 = vpop.permute.xlu1 %1249  ;;  %v1255_v29 = vpop.permute.xlu0 %1254 }
 0x182   :  { %1956 = vmatpush3.bf16.msra.mxu1 %v1201_v24 }
 0x183   :  { %1957 = vmatprep.subr.bf16.mxu1 %v1200_v25 }
 0x185   :  { %v1260_v46 = vpop.permute.xlu1 %1259 }
 0x186   :  { %1958 = vmatpush3.bf16.msra.mxu1 %v1200_v25 }
 0x187   :  { %1959 = vmatprep.subr.bf16.mxu1 %v1199_v45 }
 0x189   :  { %v1230_v25 = vpop.permute.xlu1 %1229 }
 0x18a   :  { %1960 = vmatpush3.bf16.msra.mxu1 %v1199_v45  ;;  %v2129_v45 = vld [vmem:[#allocation6 + $0x40] sm:$0xff]  }
 0x18b   :  { %1961 = vmatprep.subr.bf16.mxu1 %v2627_v43 }
 0x18e   :  { %1962 = vmatpush3.bf16.msra.mxu1 %v2627_v43  ;;  %v2128_v43 = vld [vmem:[#allocation6 + $0x38] sm:$0xff]  }
 0x18f   :  { %1963 = vmatprep.subr.bf16.mxu1 %v2613_v36 }
 0x192   :  { %1964 = vmatpush3.bf16.msra.mxu1 %v2613_v36  ;;  %v2130_v36 = vld [vmem:[#allocation6 + $0x48] sm:$0xff]  }
 0x195   :  { %1966 = vmatmul.mubr.msk.bf16.vlgmr.msra.gmra.mxu1 %vm1372_vm0, %v2122_v19 }
 0x196   :  { %1969 = vmatprep.mubr.msk.bf16.mxu1 %vm1372_vm0, %v2123_v58 }
 0x19d   :  { %1970 = vmatmul.mubr.msk.bf16.gmra.mxu1 %vm1372_vm0, %v2124_v20 }
 0x19e   :  { %1973 = vmatprep.mubr.msk.bf16.mxu1 %vm1372_vm0, %v2125_v33 }
 0x1a5   :  { %1974 = vmatmul.mubr.msk.bf16.gmra.mxu1 %vm1372_vm0, %v2126_v37 }
 0x1a6   :  { %1977 = vmatprep.mubr.msk.bf16.mxu1 %vm1372_vm0, %v2127_v42  ;;  %v1225_v42 = vpop.permute.xlu0 %1224 }
 0x1ad   :  { %1978 = vmatmul.mubr.msk.bf16.gmra.mxu1 %vm1372_vm0, %v2128_v43 }
 0x1ae   :  { %1981 = vmatprep.mubr.msk.bf16.mxu1 %vm1372_vm0, %v2129_v45 }
 0x1b5   :  { %1982 = vmatmul.mubr.msk.bf16.gmra.mxu1 %vm1372_vm0, %v2130_v36 }
 0x255   :  { %v2679_v61 = vpop.f32.mrf.mxu1 }
 0x257   :  { %v2681_v27 = vpop.f32.mrf.mxu1 }
 0x259   :  { %v2683_v39 = vpop.f32.mrf.mxu1 }
 0x25b   :  { %v1440_v31 = vpop.f32.mrf.mxu1 }
 0x25d   :  { %v1971_v12 = vpop.f32.mrf.mxu1 }
 0x25f   :  { %v1453_v5 = vpop.f32.mrf.mxu1 }
 0x260   :  { %v1454_v43 = vadd.f32 %v1453_v5, %v1245_v3  ;;  %v1235_v5 = vpop.permute.xlu0 %1234 }
 0x261   :  { %v1972_v63 = vpop.f32.mrf.mxu1 }
 0x262   :  { %v1465_v45 = vadd.f32 %v1972_v63, %v1260_v46  ;;  %v1446_v63 = vadd.f32 %v2679_v61, %v1235_v5  ;;  %v1536_v61 = vld [vmem:[%s2704_s5] sm:$0x1]  ;;  %s1607_s5 = sshll.u32 %s2210_s16, 4  ;;  %s1608_s5 = int_to_ptr.vmem [resolvable:$true] %s1607_s5 }
 0x263   :  { %v1456_v10 = vpop.f32.mrf.mxu1  ;;  %s2175_s17 = scalar_lea.vmem %s1608_s5, 16  ;;  %s2179_s18 = scalar_lea.vmem %s1608_s5, 32 }
 0x264   :  { %v1457_v19 = vadd.f32 %v1456_v10, %v1250_v18  ;;  %v1438_v10 = vadd.f32 %v2681_v27, %v1225_v42  ;;  %p2176_p10 = scmp.ne.s32.totalorder %s1608_s5, %s2175_s17  ;;  %p2180_p11 = scmp.lt.s32.totalorder %s1608_s5, %s1608_s5 }
 0x265   :  { %v1975_v38 = vpop.f32.mrf.mxu1  ;;  %p2181_p12 = scmp.lt.s32.totalorder %s2179_s18, %s2175_s17 }
 0x266   :  { %v1478_v58 = vadd.f32 %v1975_v38, %v1275_v30 }
 0x267   :  { %v1469_v23 = vpop.f32.mrf.mxu1  ;;  %p2182_p13 = por %p2181_p12, %p2180_p11 }
 0x268   :  { %v1470_v7 = vadd.f32 %v1469_v23, %v1265_v50 }
 0x269   :  { %v1976_v16 = vpop.f32.mrf.mxu1  ;;  %p2183_p0 = pnand %p2182_p13, %p2176_p10 }
 0x26a   :  { %v1481_v0 = vadd.f32 %v1976_v16, %v1280_v22  ;;  %v1520_v36 = vmax.f32 %v1470_v7, %v1478_v58  ;;  %v1548_v22 = vlaneseq }
 0x26b   :  { %v1472_v51 = vpop.f32.mrf.mxu1 }
 0x26c   :  { %v1473_v53 = vadd.f32 %v1472_v51, %v1270_v15  ;;  %v1530_v23 = vmax.f32 %v1520_v36, 0.0 }
 0x26d   :  { %v1979_v11 = vpop.f32.mrf.mxu1 }
 0x26e   :  { %v1494_v62 = vadd.f32 %v1979_v11, %v1295_v6  ;;  %v1521_v20 = vmax.f32 %v1473_v53, %v1481_v0 }
 0x26f   :  { %v1485_v54 = vpop.f32.mrf.mxu1 }
 0x270   :  { %v1486_v47 = vadd.f32 %v1485_v54, %v1285_v17  ;;  %v1549_v54 = vshrl.u32 %v1548_v22, 7 }
 0x271   :  { %v1980_v57 = vpop.f32.mrf.mxu1 }
 0x272   :  { %v1497_v49 = vadd.f32 %v1980_v57, %v1300_v1  ;;  %v1522_v2 = vmax.f32 %v1486_v47, %v1494_v62  ;;  %v1240_v1 = vpop.permute.xlu1 %1239  ;;  %v1550_v30 = vsub.s32 0, %v1549_v54  ;;  %v1546_v57 = vpop.permute.xlu0 %1545 }
 0x273   :  { %v1488_v13 = vpop.f32.mrf.mxu1  ;;  %v1449_v6 = vadd.f32 %v2683_v39, %v1240_v1 }
 0x274   :  { %v1489_v40 = vadd.f32 %v1488_v13, %v1290_v32  ;;  %v1531_v32 = vmax.f32 %v1521_v20, 0.0  ;;  %v1551_v13 = vrot.slane %v1546_v57, %v1550_v30 }
 0x275   :  { %v1983_v59 = vpop.f32.mrf.mxu1 }
 0x276   :  { %v1510_v14 = vadd.f32 %v1983_v59, %v1315_v28  ;;  %v1523_v21 = vmax.f32 %v1489_v40, %v1497_v49  ;;  %v1519_v28 = vmax.f32 %v1457_v19, %v1465_v45  ;;  %v1539_v16 = vpack.c.bf16 %v1531_v32, %v1530_v23 }
 0x277   :  { %v1501_v56 = vpop.f32.mrf.mxu1 }
 0x278   :  { %v1502_v41 = vadd.f32 %v1501_v56, %v1305_v9  ;;  %v1533_v33 = vmax.f32 %v1523_v21, 0.0  ;;  %v1441_v9 = vadd.f32 %v1440_v31, %v1230_v25  ;;  %v1529_v15 = vmax.f32 %v1519_v28, 0.0 }
 0x279   :  { %v1984_v26 = vpop.f32.mrf.mxu1 }
 0x27a   :  { %v1524_v52 = vmax.f32 %v1502_v41, %v1510_v14  ;;  %v1513_v55 = vadd.f32 %v1984_v26, %v1320_v44  ;;  %v1462_v44 = vadd.f32 %v1971_v12, %v1255_v29  ;;  %v1517_v31 = vmax.f32 %v1441_v9, %v1449_v6 }
 0x27b   :  { %v1504_v48 = vpop.f32.mrf.mxu1  ;;  %v1516_v12 = vmax.f32 %v1438_v10, %v1446_v63 }
 0x27c   :  { %v1505_v60 = vadd.f32 %v1504_v48, %v1310_v8  ;;  %v1534_v4 = vmax.f32 %v1524_v52, 0.0  ;;  %v1532_v8 = vmax.f32 %v1522_v2, 0.0  ;;  %v1518_v38 = vmax.f32 %v1454_v43, %v1462_v44 }
 0x27d   :  { %v1527_v51 = vmax.f32 %v1517_v31, 0.0  ;;  %v1526_v11 = vmax.f32 %v1516_v12, 0.0 }
 0x27e   :  { %v1525_v34 = vmax.f32 %v1505_v60, %v1513_v55  ;;  %v1540_v17 = vpack.c.bf16 %v1533_v33, %v1532_v8  ;;  %v1528_v50 = vmax.f32 %v1518_v38, 0.0 }
 0x27f   :  { %v1537_v39 = vpack.c.bf16 %v1527_v51, %v1526_v11 }
 0x280   :  { %v1535_v24 = vmax.f32 %v1525_v34, 0.0  ;;  %v1538_v27 = vpack.c.bf16 %v1529_v15, %v1528_v50 }
 0x282   :  { %v1541_v37 = vpack.c.bf16 %v1535_v24, %v1534_v4 }
 0x284   :  { %1986 = vmatpush3.bf16.msra.mxu0 %v1541_v37 }
 0x285   :  { %1987 = vmatprep.subr.bf16.mxu0 %v2208_v35 }
 0x288   :  { %1988 = vmatpush3.bf16.msra.mxu0 %v1540_v17 }
 0x289   :  { %1989 = vmatprep.subr.bf16.mxu0 %v2208_v35 }
 0x28c   :  { %1990 = vmatpush3.bf16.msra.mxu0 %v1539_v16 }
 0x28d   :  { %1991 = vmatprep.subr.bf16.mxu0 %v2208_v35 }
 0x290   :  { %1992 = vmatpush3.bf16.msra.mxu0 %v1538_v27 }
 0x291   :  { %1993 = vmatprep.subr.bf16.mxu0 %v2208_v35 }
 0x294   :  { %1994 = vmatpush3.bf16.msra.mxu0 %v1537_v39 }
 0x297   :  { %1996 = vmatmul.mubr.msk.bf16.vlgmr.msra.gmra.mxu0 %vm1372_vm0, %v1536_v61 }
 0x357   :  { %v1589_v18 = vpop.f32.mrf.mxu0 }
 0x358   :  { %v1590_v59 = vadd.f32 %v1589_v18, %v1551_v13 }
 0x359   :  { %v1997_v3 = vpop.f32.mrf.mxu0 }
 0x35a   :  { %v1595_v56 = vsub.f32 0.0, %v1590_v59 }
 0x35b   :  { %v1592_v41 = vpop.f32.mrf.mxu0 }
 0x35c   :  { %v1596_v26 = vmul.f32 1.442695, %v1595_v56 }
 0x35d   :  { %v1998_v35 = vpop.f32.mrf.mxu0 }
 0x35e   :  { %2131 = vpow2.f32 %v1596_v26 }
 0x36b   :  { %v2132_v40 = vpop.eup %2131 }
 0x36c   :  { %v1598_v14 = vadd.f32 1.0, %v2132_v40 }
 0x36e   :  { %2133 = vrcp.f32 %v1598_v14 }
 0x37b   :  { %v2134_v46 = vpop.eup %2133 }
 0x37c   :  { %1600 = vst [vmem:[#allocation8] sm:$0x1] %v2134_v46 }
 0x37d   :  { %2186 = shalt.err (!%p2183_p0)
}
 0x37e   :  { %1610 = dma.vmem_to_hbm [thread:$0]  %s1608_s5, 16, %s2706_s7, [#allocation5]  }
 0x37f   :  { %2199 = dma.done.wait [#allocation5], 16  }
 0x380   :  { %2200 = vsyncadd [#allocation5], 4294967280 }
 0x381   :  { %1614 = vsyncpa [#allocation4], 1 }
 0x382   :  { %1615 = vsyncpa [#allocation7], 1 }
 0x383   :  { %1616 = vsyncpa [#allocation5], 1 }

</bundles_post_ra>
